<compile_context>
chip_gen: v7x
topology: tpu7x:2x2x1
jax: 0.10.0
libtpu: 0.0.40
codegen_flags: <defaults>
</compile_context>

<pallas_src>
import functools

import jax
import jax.numpy as jnp
from jax.experimental import pallas as pl
from jax.experimental.pallas import tpu as pltpu


# ----------------------------------------------------------------------------- #
# Pallas kernels: full-K strip matmul with fused scale/bias (+skip) + activation
# ----------------------------------------------------------------------------- #
def _activate(y, act):
    if act == "leaky_relu":
        return jnp.where(y >= 0.0, y, 0.2 * y)
    if act == "tanh":
        return jnp.tanh(y)
    return y  # "none"


def _mm_kernel(a_ref, w_ref, s_ref, b_ref, o_ref, *, act):
    y = jnp.dot(a_ref[...], w_ref[...], preferred_element_type=jnp.float32)
    y = y * s_ref[...] + b_ref[...]
    o_ref[...] = _activate(y, act).astype(o_ref.dtype)


def _mm_skip_kernel(a_ref, w_ref, s_ref, b_ref, skip_ref, o_ref, *, act):
    y = jnp.dot(a_ref[...], w_ref[...], preferred_element_type=jnp.float32)
    y = y * s_ref[...] + b_ref[...] + skip_ref[...].astype(jnp.float32)
    o_ref[...] = _activate(y, act).astype(o_ref.dtype)


def _round_up(v, m):
    return ((v + m - 1) // m) * m


def _pick_tm(M):
    if M >= 4096:
        return 512            # >= 8 M-tiles -> shards across v7x's 2 TensorCores
    if M >= 1024:
        return 256
    if M >= 256:
        return 128
    return _round_up(M, 8)    # tiny deep layers: one small (sublane-legal) tile


def fused_matmul(a, w, scale, bias, skip=None, *, act):
    """act((a @ w) * scale + bias [+ skip]).  bf16 MXU inputs, f32 epilogue.

    Weight-stationary: full-K / full-N strips, 1-D grid over M row tiles.
    """
    M, K = a.shape
    K2, N = w.shape
    assert K == K2

    tm = _pick_tm(M)
    Mp = _round_up(M, tm)
    Kp = _round_up(K, 128)
    Np = _round_up(N, 128)

    a = a.astype(jnp.bfloat16)
    w = w.astype(jnp.bfloat16)
    if (Mp, Kp) != (M, K):
        a = jnp.pad(a, ((0, Mp - M), (0, Kp - K)))
    if (Kp, Np) != (K, N):
        w = jnp.pad(w, ((0, Kp - K), (0, Np - N)))
    s = jnp.pad(scale.astype(jnp.float32).reshape(1, -1), ((0, 0), (0, Np - N)))
    b = jnp.pad(bias.astype(jnp.float32).reshape(1, -1), ((0, 0), (0, Np - N)))

    in_specs = [
        pl.BlockSpec((tm, Kp), lambda i: (i, 0)),   # A: streamed once over M
        pl.BlockSpec((Kp, Np), lambda i: (0, 0)),   # W: weight-stationary
        pl.BlockSpec((1, Np), lambda i: (0, 0)),    # scale: fetched once
        pl.BlockSpec((1, Np), lambda i: (0, 0)),    # bias:  fetched once
    ]
    args = [a, w, s, b]
    if skip is None:
        kernel = functools.partial(_mm_kernel, act=act)
    else:
        kernel = functools.partial(_mm_skip_kernel, act=act)
        skip = skip.astype(jnp.bfloat16)
        if skip.shape != (Mp, Np):
            skip = jnp.pad(skip, ((0, Mp - skip.shape[0]), (0, Np - skip.shape[1])))
        in_specs.append(pl.BlockSpec((tm, Np), lambda i: (i, 0)))
        args.append(skip)

    out = pl.pallas_call(
        kernel,
        out_shape=jax.ShapeDtypeStruct((Mp, Np), jnp.bfloat16),
        grid_spec=pltpu.PrefetchScalarGridSpec(
            num_scalar_prefetch=0,
            grid=(Mp // tm,),
            in_specs=in_specs,
            out_specs=pl.BlockSpec((tm, Np), lambda i: (i, 0)),
        ),
        compiler_params=pltpu.CompilerParams(
            dimension_semantics=("parallel",),
            vmem_limit_bytes=48 * 1024 * 1024,   # worst case ~20 MiB; < v7x 64 MiB
        ),
    )(*args)
    return out[:M, :N]


# ----------------------------------------------------------------------------- #
# Conv / ConvTranspose lowered to patch-matrix + Pallas matmul
# ----------------------------------------------------------------------------- #
def _im2col(x, ks, stride, pad):
    # x: (N, H, W, C) -> (N*Ho*Wo, ks*ks*C), patch order (dy, dx, c)
    N, H, W, C = x.shape
    if pad:
        x = jnp.pad(x, ((0, 0), (pad, pad), (pad, pad), (0, 0)))
    Ho = (H + 2 * pad - ks) // stride + 1
    Wo = (W + 2 * pad - ks) // stride + 1
    patches = []
    for dy in range(ks):
        for dx in range(ks):
            patches.append(
                x[:, dy:dy + stride * Ho:stride, dx:dx + stride * Wo:stride, :])
    p = jnp.concatenate(patches, axis=-1)
    return p.reshape(N * Ho * Wo, ks * ks * C), (N, Ho, Wo)


@functools.partial(jax.jit, static_argnames=("stride", "padding", "act"))
def conv2d_fused(x, w, scale, bias, skip=None, *, stride, padding, act):
    # x: NHWC bf16; w: (Cout, Cin, kh, kw) — PyTorch layout.
    cout, cin, kh, kw = w.shape
    a, (N, Ho, Wo) = _im2col(x, kh, stride, padding)
    wm = jnp.transpose(w, (2, 3, 1, 0)).reshape(kh * kw * cin, cout)
    skip_m = None if skip is None else skip.reshape(N * Ho * Wo, cout)
    y = fused_matmul(a, wm, scale, bias, skip_m, act=act)
    return y.reshape(N, Ho, Wo, cout)


@functools.partial(jax.jit, static_argnames=("act",))
def conv_transpose2d_fused(x, w_t, scale, bias, *, act):
    """ConvTranspose2d(ks=3, stride=2, padding=1, output_padding=1) via sub-pixel
    decomposition: one 2x2 stride-1 conv producing 4*Cout phase channels, then
    depth-to-space.  Never materializes the zero-dilated activation."""
    cin, cout, kh, kw = w_t.shape
    N, H, W, C = x.shape
    assert (kh, kw) == (3, 3) and C == cin

    # phase p -> ((window_offset, kernel_index), ...) along each spatial axis
    taps = {0: ((0, 1),), 1: ((1, 0), (0, 2))}
    w2 = jnp.zeros((2, 2, cin, 2, 2, cout), w_t.dtype)   # (wy, wx, ci, py, px, co)
    for py in (0, 1):
        for px in (0, 1):
            for wy, ky in taps[py]:
                for wx, kx in taps[px]:
                    w2 = w2.at[wy, wx, :, py, px, :].set(w_t[:, :, ky, kx])
    wm = w2.reshape(4 * cin, 4 * cout)

    xp = jnp.pad(x, ((0, 0), (0, 1), (0, 1), (0, 0)))     # zero row/col bottom+right
    a, _ = _im2col(xp, 2, 1, 0)                           # (N*H*W, 4*cin)
    y = fused_matmul(a, wm, jnp.tile(scale, 4), jnp.tile(bias, 4), act=act)
    y = y.reshape(N, H, W, 2, 2, cout)
    y = jnp.transpose(y, (0, 1, 3, 2, 4, 5)).reshape(N, 2 * H, 2 * W, cout)
    return y


# ----------------------------------------------------------------------------- #
# Parameter initialization (deterministic, synthetic) + BN folding
# ----------------------------------------------------------------------------- #
def _init_conv(key, cin, cout, ks):
    fan_in = cin * ks * ks
    w = jax.random.normal(key, (cout, cin, ks, ks), jnp.float32) * jnp.sqrt(2.0 / fan_in)
    return {"w": w, "b": jnp.zeros((cout,), jnp.float32)}


def _init_convT(key, cin, cout, ks):
    fan_in = cin * ks * ks
    w = jax.random.normal(key, (cin, cout, ks, ks), jnp.float32) * jnp.sqrt(2.0 / fan_in)
    return {"w": w, "b": jnp.zeros((cout,), jnp.float32)}


def _init_bn(key, c):
    kg, kb, km = jax.random.split(key, 3)
    return {"gamma": 1.0 + 0.1 * jax.random.normal(kg, (c,), jnp.float32),
            "beta": 0.05 * jax.random.normal(kb, (c,), jnp.float32),
            "mean": 0.01 * jax.random.normal(km, (c,), jnp.float32),
            "var": jnp.ones((c,), jnp.float32)}


def _fold_bn(conv_b, bn, eps=1e-5):
    if bn is None:
        return jnp.ones_like(conv_b), conv_b
    scale = bn["gamma"] / jnp.sqrt(bn["var"] + eps)
    bias = bn["beta"] + scale * (conv_b - bn["mean"])
    return scale, bias


def _init_convnorm(key, cin, cout, norm=True):
    kc, kn = jax.random.split(key)
    return {"conv": _init_conv(kc, cin, cout, 3),
            "bn": _init_bn(kn, cout) if norm else None}


def _init_convtnorm(key, cin, cout, norm=True):
    kc, kn = jax.random.split(key)
    return {"conv": _init_convT(kc, cin, cout, 3),
            "bn": _init_bn(kn, cout) if norm else None}


def _init_reslayer(key, l, c):
    blocks = []
    for _ in range(l):
        key, k1, k2, k3, k4 = jax.random.split(key, 5)
        blocks.append({"c1": _init_conv(k1, c, c, 3), "bn1": _init_bn(k2, c),
                       "c2": _init_conv(k3, c, c, 3), "bn2": _init_bn(k4, c)})
    return blocks


def init_wide_resnet_unet(key, input_channels=3):
    keys = iter(jax.random.split(key, 64))
    nk = lambda: next(keys)
    params = {"first_conv": _init_convnorm(nk(), input_channels, 64, norm=True)}
    enc_io = [(64, 128), (128, 256), (256, 256), (256, 256),
              (256, 256), (256, 256), (256, 256)]
    params["encoder"] = [{"res": _init_reslayer(nk(), 2, ci),
                          "down": _init_convnorm(nk(), ci, co, norm=True)}
                         for ci, co in enc_io]
    params["first_upsample"] = _init_convtnorm(nk(), 256, 256, norm=True)
    dec_io = [(512, 256), (512, 256), (512, 256), (512, 256), (512, 128)]
    params["decoder"] = [{"res": _init_reslayer(nk(), 2, ci),
                          "up": _init_convtnorm(nk(), ci, co, norm=True)}
                         for ci, co in dec_io]
    params["last"] = _init_convtnorm(nk(), 256, input_channels, norm=False)
    return params


def _fold_convnorm(p):
    s, b = _fold_bn(p["conv"]["b"], p["bn"])
    return {"w": p["conv"]["w"], "scale": s, "bias": b}


def _fold_resblock(bp):
    s1, b1 = _fold_bn(bp["c1"]["b"], bp["bn1"])
    s2, b2 = _fold_bn(bp["c2"]["b"], bp["bn2"])
    return {"c1": {"w": bp["c1"]["w"], "scale": s1, "bias": b1},
            "c2": {"w": bp["c2"]["w"], "scale": s2, "bias": b2}}


def fold_params(params):
    return {
        "first_conv": _fold_convnorm(params["first_conv"]),
        "encoder": [{"res": [_fold_resblock(b) for b in l["res"]],
                     "down": _fold_convnorm(l["down"])} for l in params["encoder"]],
        "first_upsample": _fold_convnorm(params["first_upsample"]),
        "decoder": [{"res": [_fold_resblock(b) for b in l["res"]],
                     "up": _fold_convnorm(l["up"])} for l in params["decoder"]],
        "last": _fold_convnorm(params["last"]),
    }


# ----------------------------------------------------------------------------- #
# Model forward (glue around the Pallas conv kernels)
# ----------------------------------------------------------------------------- #
def _apply_conv(p, x, *, stride, act):
    return conv2d_fused(x, p["w"], p["scale"], p["bias"],
                        stride=stride, padding=1, act=act)


def _apply_convt(p, x, *, act):
    return conv_transpose2d_fused(x, p["w"], p["scale"], p["bias"], act=act)


def _apply_reslayer(blocks, x):
    for bp in blocks:
        h = conv2d_fused(x, bp["c1"]["w"], bp["c1"]["scale"], bp["c1"]["bias"],
                         stride=1, padding=1, act="leaky_relu")
        # second conv: residual add + leaky fused into the kernel epilogue
        x = conv2d_fused(h, bp["c2"]["w"], bp["c2"]["scale"], bp["c2"]["bias"],
                         x, stride=1, padding=1, act="leaky_relu")
    return x


def wide_resnet_unet_forward(fparams, x_nchw):
    x = jnp.transpose(x_nchw, (0, 2, 3, 1)).astype(jnp.bfloat16)   # NCHW -> NHWC
    x = _apply_conv(fparams["first_conv"], x, stride=1, act="leaky_relu")
    d_feats = []
    for layer in fparams["encoder"]:
        x = _apply_reslayer(layer["res"], x)
        x = _apply_conv(layer["down"], x, stride=2, act="leaky_relu")
        d_feats.append(x)
    d_feats = d_feats[::-1][1:]                                    # reverse, pop(0)
    x = _apply_convt(fparams["first_upsample"], x, act="leaky_relu")
    for i, layer in enumerate(fparams["decoder"]):
        x = jnp.concatenate([x, d_feats[i]], axis=-1)              # channel concat
        x = _apply_reslayer(layer["res"], x)
        x = _apply_convt(layer["up"], x, act="leaky_relu")
    x = jnp.concatenate([x, d_feats[-1]], axis=-1)
    x = _apply_convt(fparams["last"], x, act="tanh")               # final 256 -> 3
    return jnp.transpose(x.astype(jnp.float32), (0, 3, 1, 2))      # NHWC -> NCHW


# ----------------------------------------------------------------------------- #
if __name__ == "__main__":
    key = jax.random.PRNGKey(0)
    pkey, xkey = jax.random.split(key)

    # Architecture has 7 stride-2 downsamples -> minimum spatial size is 128.
    B, C, S = 1, 3, 128
    params = init_wide_resnet_unet(pkey, input_channels=C)
    fparams = fold_params(params)
    x = jax.random.normal(xkey, (B, C, S, S), jnp.float32)

    y = wide_resnet_unet_forward(fparams, x)
    y = jax.block_until_ready(y)

    assert y.shape == (B, C, S, S), y.shape
    assert bool(jnp.all(jnp.isfinite(y)))
    assert bool(jnp.all(jnp.abs(y) <= 1.0 + 1e-5))  # tanh output range
    print("KERNEL_OK")
</pallas_src>

<mosaic_0001>
module attributes {stable_mosaic.version = 11 : i64} {
  func.func @_mm_kernel(%arg0: i32, %arg1: memref<512x128xbf16, #tpu.memory_space<vmem>>, %arg2: memref<128x128xbf16, #tpu.memory_space<vmem>>, %arg3: memref<1x128xf32, #tpu.memory_space<vmem>>, %arg4: memref<1x128xf32, #tpu.memory_space<vmem>>, %arg5: memref<512x128xbf16, #tpu.memory_space<vmem>>) attributes {dimension_semantics = [#tpu.dimension_semantics<parallel>], iteration_bounds = array<i64: 32>, scalar_prefetch = 0 : i64, scratch_operands = 0 : i64, tpu.core_type = #tpu.core_type<tc>, window_params = [{transform_indices = @transform_0, window_bounds = array<i64: 512, 128>}, {pipeline_mode = #tpu.pipeline_mode<synchronous>, transform_indices = @transform_1, window_bounds = array<i64: 128, 128>}, {pipeline_mode = #tpu.pipeline_mode<synchronous>, transform_indices = @transform_2, window_bounds = array<i64: 1, 128>}, {pipeline_mode = #tpu.pipeline_mode<synchronous>, transform_indices = @transform_3, window_bounds = array<i64: 1, 128>}, {transform_indices = @transform_4, window_bounds = array<i64: 512, 128>}]} {
    %c0 = arith.constant 0 : index
    %c0_0 = arith.constant 0 : index
    %0 = vector.load %arg1[%c0, %c0_0] : memref<512x128xbf16, #tpu.memory_space<vmem>>, vector<512x128xbf16>
    %c0_1 = arith.constant 0 : index
    %c0_2 = arith.constant 0 : index
    %1 = vector.load %arg2[%c0_1, %c0_2] : memref<128x128xbf16, #tpu.memory_space<vmem>>, vector<128x128xbf16>
    %cst = arith.constant dense<0.000000e+00> : vector<512x128xf32>
    %2 = tpu.matmul %0, %1, %cst {dimension_numbers = #tpu.dot_dimension_numbers<[1], [0], [0], [1], [0, 0, 1, 1], [], []>} : vector<512x128xbf16>, vector<128x128xbf16>, vector<512x128xf32> -> vector<512x128xf32>
    %c0_3 = arith.constant 0 : index
    %c0_4 = arith.constant 0 : index
    %3 = vector.load %arg3[%c0_3, %c0_4] : memref<1x128xf32, #tpu.memory_space<vmem>>, vector<1x128xf32>
    %4 = vector.broadcast %3 : vector<1x128xf32> to vector<512x128xf32>
    %5 = arith.mulf %2, %4 : vector<512x128xf32>
    %c0_5 = arith.constant 0 : index
    %c0_6 = arith.constant 0 : index
    %6 = vector.load %arg4[%c0_5, %c0_6] : memref<1x128xf32, #tpu.memory_space<vmem>>, vector<1x128xf32>
    %7 = vector.broadcast %6 : vector<1x128xf32> to vector<512x128xf32>
    %8 = arith.addf %5, %7 : vector<512x128xf32>
    %cst_7 = arith.constant 0.000000e+00 : f32
    %9 = vector.broadcast %cst_7 : f32 to vector<512x128xf32>
    %10 = arith.cmpf oge, %8, %9 : vector<512x128xf32>
    %cst_8 = arith.constant 2.000000e-01 : f32
    %11 = vector.broadcast %cst_8 : f32 to vector<512x128xf32>
    %12 = arith.mulf %11, %8 : vector<512x128xf32>
    %13 = arith.select %10, %8, %12 : vector<512x128xi1>, vector<512x128xf32>
    %14 = arith.truncf %13 : vector<512x128xf32> to vector<512x128xbf16>
    %c0_9 = arith.constant 0 : index
    %c0_10 = arith.constant 0 : index
    %15 = vector.load %arg5[%c0_9, %c0_10] : memref<512x128xbf16, #tpu.memory_space<vmem>>, vector<512x128xbf16>
    tpu.vector_store %arg5[%c0_9, %c0_10], %14 {strides = array<i32>} : memref<512x128xbf16, #tpu.memory_space<vmem>>, vector<512x128xbf16>,
    return
  }
  func.func @transform_0(%arg0: i32) -> (i32, i32) {
    %c0_i32 = arith.constant 0 : i32
    %c0_i32_0 = arith.constant 0 : i32
    return %arg0, %c0_i32 : i32, i32
  }
  func.func @transform_1(%arg0: i32) -> (i32, i32) {
    %c0_i32 = arith.constant 0 : i32
    %c0_i32_0 = arith.constant 0 : i32
    %c0_i32_1 = arith.constant 0 : i32
    return %c0_i32, %c0_i32_0 : i32, i32
  }
  func.func @transform_2(%arg0: i32) -> (i32, i32) {
    %c0_i32 = arith.constant 0 : i32
    %c0_i32_0 = arith.constant 0 : i32
    %c0_i32_1 = arith.constant 0 : i32
    return %c0_i32, %c0_i32_0 : i32, i32
  }
  func.func @transform_3(%arg0: i32) -> (i32, i32) {
    %c0_i32 = arith.constant 0 : i32
    %c0_i32_0 = arith.constant 0 : i32
    %c0_i32_1 = arith.constant 0 : i32
    return %c0_i32, %c0_i32_0 : i32, i32
  }
  func.func @transform_4(%arg0: i32) -> (i32, i32) {
    %c0_i32 = arith.constant 0 : i32
    %c0_i32_0 = arith.constant 0 : i32
    return %arg0, %c0_i32 : i32, i32
  }
}

</mosaic_0001>

<bundles_post_ra>
// kernel: conv2d_fused.1
= control target key start
LH: loop header
LB: loop body
LE: loop exit
PB: predicated region body
PF: predicated region fallthrough
CT: control target
= control target key end

     0   :  { %s2110_s15 = smov 0   ;;  %s2462_s0 = inlined_call_operand.vmem [shape: bf16[16384,128], index: 0, kind: input, shape index: {}]   ;;  %s2463_s1 = inlined_call_operand.vmem [shape: bf16[128,128], index: 1, kind: input, shape index: {}]   ;;  %s2464_s2 = inlined_call_operand.vmem [shape: f32[1,128], index: 2, kind: input, shape index: {}]   ;;  %s2465_s3 = inlined_call_operand.vmem [shape: f32[1,128], index: 3, kind: input, shape index: {}]   ;;  %s2466_s4 = inlined_call_operand.vmem [shape: bf16[16384,128], index: 4, kind: output, shape index: {}]  }
   0x1 LB: > { %s1521_s16 = sadd.s32 4294967295, %s2083_s15   ;;  %p1525_p0 = scmp.ge.s32.totalorder %s2083_s15, 1  ;;  %s2083_s15 = sphi %s2110_s15, %s14_s15  }
   0x2   : > { %p163_p1 = scmp.lt.s32.totalorder %s2083_s15, 33 }
   0x4   : > { %p164_p2 = pnand %p1525_p0, %p163_p1 }
   0x5   : > { %v2037_v0 = vld [vmem:[%s2463_s1] sm:$0xff] (!%p164_p2)   ;;  %s1526_s19 = sshll.u32 (!%p164_p2), %s1521_s16, 6  ;;  %v2038_v1 = vld [vmem:[%s2463_s1 + $0x8] sm:$0xff] (!%p164_p2)   ;;  %v2039_v2 = vld [vmem:[%s2463_s1 + $0x10] sm:$0xff] (!%p164_p2)  }
   0x6   : > { %167 = sbr.rel (%p164_p2) target bundleno = 344 (0x158), region = 36  ;;  %p190_p3 = scmp.lt.s32.totalorder (!%p164_p2), %s1526_s19, 2047  ;;  %1933 = vmatprep.subr.bf16.mxu0 (!%p164_p2), %v2037_v0  ;;  %2013 = vmatprep.subr.bf16.mxu1 (!%p164_p2), %v2037_v0  ;;  %v2040_v3 = vld [vmem:[%s2463_s1 + $0x18] sm:$0xff] (!%p164_p2)   ;;  %v2041_v6 = vld [vmem:[%s2463_s1 + $0x20] sm:$0xff] (!%p164_p2)   ;;  %v2042_v7 = vld [vmem:[%s2463_s1 + $0x28] sm:$0xff] (!%p164_p2)  }
   0x7   : > { %1934 = vmatpush3.bf16.msra.mxu0 (!%p164_p2), %v2037_v0  ;;  %2021 = vmatpush3.bf16.msra.mxu1 (!%p164_p2), %v2037_v0  ;;  %v2043_v8 = vld [vmem:[%s2463_s1 + $0x30] sm:$0xff] (!%p164_p2)   ;;  %v2044_v9 = vld [vmem:[%s2463_s1 + $0x38] sm:$0xff] (!%p164_p2)   ;;  %v2187_v40 = vld [vmem:[%s2464_s2] ss:$0 sm:$0xff] (!%p164_p2) }
   0x8   : > { %1935 = vmatprep.subr.bf16.mxu0 (!%p164_p2), %v2038_v1  ;;  %2014 = vmatprep.subr.bf16.mxu1 (!%p164_p2), %v2038_v1  ;;  %v2192_v42 = vld [vmem:[%s2465_s3] ss:$0 sm:$0xff] (!%p164_p2) }
   0xb   : > { %1936 = vmatpush3.bf16.msra.mxu0 (!%p164_p2), %v2038_v1  ;;  %2022 = vmatpush3.bf16.msra.mxu1 (!%p164_p2), %v2038_v1 }
   0xc   : > { %1937 = vmatprep.subr.bf16.mxu0 (!%p164_p2), %v2039_v2  ;;  %2015 = vmatprep.subr.bf16.mxu1 (!%p164_p2), %v2039_v2 }
   0xd   : > { %s2468_s19 = smov (!%p190_p3, %s1526_s19), 2047 }
   0xe   : > { %s1527_s24 = sshll.u32 %s2468_s19, 2 }
   0xf   : > { %s2135_s27 = scalar_lea.vmem %s2462_s0, %s1527_s24  ;;  %1938 = vmatpush3.bf16.msra.mxu0 %v2039_v2  ;;  %2023 = vmatpush3.bf16.msra.mxu1 %v2039_v2  ;;  %s2215_s20 = scalar_lea.vmem %s2466_s4, %s1527_s24 }
  0x10   : > { %v2045_v4 = vld [vmem:[%s2135_s27] sm:$0xff]   ;;  %1939 = vmatprep.subr.bf16.mxu0 %v2040_v3  ;;  %2016 = vmatprep.subr.bf16.mxu1 %v2040_v3  ;;  %v2047_v10 = vld [vmem:[%s2135_s27 + $0x8] sm:$0xff]   ;;  %v2049_v12 = vld [vmem:[%s2135_s27 + $0x10] sm:$0xff]  }
  0x11   : > { %v2046_v5 = vld [vmem:[%s2135_s27 + $0x80] sm:$0xff]   ;;  %1949 = vmatprep.mubr.bf16.mxu0 %v2045_v4  ;;  %v2048_v11 = vld [vmem:[%s2135_s27 + $0x88] sm:$0xff]   ;;  %v2050_v13 = vld [vmem:[%s2135_s27 + $0x90] sm:$0xff]  }
  0x12   : > { %1981 = vmatprep.mubr.bf16.mxu1 %v2046_v5  ;;  %v2051_v14 = vld [vmem:[%s2135_s27 + $0x18] sm:$0xff]   ;;  %v2053_v16 = vld [vmem:[%s2135_s27 + $0x20] sm:$0xff]   ;;  %v2055_v18 = vld [vmem:[%s2135_s27 + $0x28] sm:$0xff]  }
  0x13   : > { %1940 = vmatpush3.bf16.msra.mxu0 %v2040_v3  ;;  %2024 = vmatpush3.bf16.msra.mxu1 %v2040_v3  ;;  %v2052_v15 = vld [vmem:[%s2135_s27 + $0x98] sm:$0xff]   ;;  %v2054_v17 = vld [vmem:[%s2135_s27 + $0xa0] sm:$0xff]   ;;  %v2056_v19 = vld [vmem:[%s2135_s27 + $0xa8] sm:$0xff]  }
  0x14   : > { %1941 = vmatprep.subr.bf16.mxu0 %v2041_v6  ;;  %2017 = vmatprep.subr.bf16.mxu1 %v2041_v6  ;;  %v2057_v20 = vld [vmem:[%s2135_s27 + $0x30] sm:$0xff]   ;;  %v2059_v22 = vld [vmem:[%s2135_s27 + $0x38] sm:$0xff]   ;;  %v2061_v24 = vld [vmem:[%s2135_s27 + $0x40] sm:$0xff]  }
  0x15   : > { %v2058_v21 = vld [vmem:[%s2135_s27 + $0xb0] sm:$0xff]   ;;  %v2060_v23 = vld [vmem:[%s2135_s27 + $0xb8] sm:$0xff]   ;;  %v2062_v25 = vld [vmem:[%s2135_s27 + $0xc0] sm:$0xff]  }
  0x16   : > { %v2063_v26 = vld [vmem:[%s2135_s27 + $0x48] sm:$0xff]   ;;  %v2065_v28 = vld [vmem:[%s2135_s27 + $0x50] sm:$0xff]   ;;  %v2067_v30 = vld [vmem:[%s2135_s27 + $0x58] sm:$0xff]  }
  0x17   : > { %1942 = vmatpush3.bf16.msra.mxu0 %v2041_v6  ;;  %2025 = vmatpush3.bf16.msra.mxu1 %v2041_v6  ;;  %v2064_v27 = vld [vmem:[%s2135_s27 + $0xc8] sm:$0xff]   ;;  %v2066_v29 = vld [vmem:[%s2135_s27 + $0xd0] sm:$0xff]   ;;  %v2068_v31 = vld [vmem:[%s2135_s27 + $0xd8] sm:$0xff]  }
  0x18   : > { %1943 = vmatprep.subr.bf16.mxu0 %v2042_v7  ;;  %2018 = vmatprep.subr.bf16.mxu1 %v2042_v7  ;;  %v2069_v32 = vld [vmem:[%s2135_s27 + $0x60] sm:$0xff]   ;;  %v2071_v34 = vld [vmem:[%s2135_s27 + $0x68] sm:$0xff]   ;;  %v2073_v36 = vld [vmem:[%s2135_s27 + $0x70] sm:$0xff]  }
  0x19   : > { %v2070_v33 = vld [vmem:[%s2135_s27 + $0xe0] sm:$0xff]   ;;  %v2072_v35 = vld [vmem:[%s2135_s27 + $0xe8] sm:$0xff]   ;;  %v2074_v37 = vld [vmem:[%s2135_s27 + $0xf0] sm:$0xff]  }
  0x1a   : > { %v2075_v38 = vld [vmem:[%s2135_s27 + $0x78] sm:$0xff]  }
  0x1b   : > { %1944 = vmatpush3.bf16.msra.mxu0 %v2042_v7  ;;  %2026 = vmatpush3.bf16.msra.mxu1 %v2042_v7  ;;  %v2076_v39 = vld [vmem:[%s2135_s27 + $0xf8] sm:$0xff]  }
  0x1c   : > { %1945 = vmatprep.subr.bf16.mxu0 %v2043_v8  ;;  %2019 = vmatprep.subr.bf16.mxu1 %v2043_v8 }
  0x1f   : > { %1946 = vmatpush3.bf16.msra.mxu0 %v2043_v8  ;;  %2027 = vmatpush3.bf16.msra.mxu1 %v2043_v8 }
  0x20   : > { %1947 = vmatprep.subr.bf16.mxu0 %v2044_v9  ;;  %2020 = vmatprep.subr.bf16.mxu1 %v2044_v9 }
  0x23   : > { %1948 = vmatpush3.bf16.msra.mxu0 %v2044_v9  ;;  %2028 = vmatpush3.bf16.msra.mxu1 %v2044_v9 }
  0x26   : > { %1950 = vmatmul.mubr.bf16.vlgmr.msra.gmra.mrb[0].mxu0 %v2047_v10  ;;  %1982 = vmatmul.mubr.bf16.vlgmr.msra.gmra.mrb[0].mxu1 %v2048_v11 }
  0x27   : > { %1953 = vmatprep.mubr.bf16.mxu0 %v2049_v12  ;;  %1985 = vmatprep.mubr.bf16.mxu1 %v2050_v13 }
  0x2e   : > { %1954 = vmatmul.mubr.bf16.gmra.mrb[4].mxu0 %v2051_v14  ;;  %1986 = vmatmul.mubr.bf16.gmra.mrb[4].mxu1 %v2052_v15 }
  0x2f   : > { %1957 = vmatprep.mubr.bf16.mxu0 %v2053_v16  ;;  %1989 = vmatprep.mubr.bf16.mxu1 %v2054_v17 }
  0x36   : > { %1958 = vmatmul.mubr.bf16.gmra.mrb[8].mxu0 %v2055_v18  ;;  %1990 = vmatmul.mubr.bf16.gmra.mrb[8].mxu1 %v2056_v19 }
  0x37   : > { %1961 = vmatprep.mubr.bf16.mxu0 %v2057_v20  ;;  %1993 = vmatprep.mubr.bf16.mxu1 %v2058_v21 }
  0x3e   : > { %1962 = vmatmul.mubr.bf16.gmra.mrb[12].mxu0 %v2059_v22  ;;  %1994 = vmatmul.mubr.bf16.gmra.mrb[12].mxu1 %v2060_v23 }
  0x3f   : > { %1965 = vmatprep.mubr.bf16.mxu0 %v2061_v24  ;;  %1997 = vmatprep.mubr.bf16.mxu1 %v2062_v25 }
  0x46   : > { %1966 = vmatmul.mubr.bf16.gmra.mrb[16].mxu0 %v2063_v26  ;;  %1998 = vmatmul.mubr.bf16.gmra.mrb[16].mxu1 %v2064_v27 }
  0x47   : > { %1969 = vmatprep.mubr.bf16.mxu0 %v2065_v28  ;;  %2001 = vmatprep.mubr.bf16.mxu1 %v2066_v29 }
  0x4e   : > { %1970 = vmatmul.mubr.bf16.gmra.mrb[20].mxu0 %v2067_v30  ;;  %2002 = vmatmul.mubr.bf16.gmra.mrb[20].mxu1 %v2068_v31 }
  0x4f   : > { %1973 = vmatprep.mubr.bf16.mxu0 %v2069_v32  ;;  %2005 = vmatprep.mubr.bf16.mxu1 %v2070_v33 }
  0x56   : > { %1974 = vmatmul.mubr.bf16.gmra.mrb[24].mxu0 %v2071_v34  ;;  %2006 = vmatmul.mubr.bf16.gmra.mrb[24].mxu1 %v2072_v35 }
  0x57   : > { %1977 = vmatprep.mubr.bf16.mxu0 %v2073_v36  ;;  %2009 = vmatprep.mubr.bf16.mxu1 %v2074_v37 }
  0x5e   : > { %1978 = vmatmul.mubr.bf16.gmra.mrb[28].mxu0 %v2075_v38  ;;  %2010 = vmatmul.mubr.bf16.gmra.mrb[28].mxu1 %v2076_v39 }
  0xf9   : > { %v1951_v41 = vpop.f32.mrb[0].mxu0  ;;  %v1983_v43 = vpop.f32.mrb[0].mxu1 }
  0xfa   : > { %v820_v44 = vmul.f32 %v1951_v41, %v2187_v40  ;;  %v852_v45 = vmul.f32 %v1983_v43, %v2187_v40  ;;  %v556_v46 = vpop.f32.mrb[1].mxu0  ;;  %v684_v47 = vpop.f32.mrb[1].mxu1 }
  0xfb   : > { %v818_v48 = vmul.f32 %v2187_v40, %v556_v46  ;;  %v850_v49 = vmul.f32 %v2187_v40, %v684_v47  ;;  %v1952_v50 = vpop.f32.mrb[2].mxu0  ;;  %v1984_v51 = vpop.f32.mrb[2].mxu1 }
  0xfc   : > { %v891_v52 = vadd.f32 %v2192_v42, %v820_v44  ;;  %v923_v53 = vadd.f32 %v2192_v42, %v852_v45  ;;  %v821_v54 = vmul.f32 %v1952_v50, %v2187_v40  ;;  %v853_v55 = vmul.f32 %v1984_v51, %v2187_v40  ;;  %v559_v56 = vpop.f32.mrb[3].mxu0  ;;  %v687_v57 = vpop.f32.mrb[3].mxu1 }
  0xfd   : > { %v889_v58 = vadd.f32 %v2192_v42, %v818_v48  ;;  %v921_v59 = vadd.f32 %v2192_v42, %v850_v49  ;;  %v819_v60 = vmul.f32 %v2187_v40, %v559_v56  ;;  %v851_v61 = vmul.f32 %v2187_v40, %v687_v57 }
  0xfe   : > { %vm955_vm0 = vcmp.ge.f32.partialorder %v891_v52, 0.0  ;;  %v1019_v62 = vmul.f32 0.2, %v891_v52  ;;  %vm987_vm1 = vcmp.ge.f32.partialorder %v923_v53, 0.0  ;;  %v1051_v63 = vmul.f32 0.2, %v923_v53 }
  0xff   : > { %vm953_vm2 = vcmp.ge.f32.partialorder %v889_v58, 0.0  ;;  %v1017_v0 = vmul.f32 0.2, %v889_v58  ;;  %vm985_vm3 = vcmp.ge.f32.partialorder %v921_v59, 0.0  ;;  %v1049_v1 = vmul.f32 0.2, %v921_v59 }
 0x100   : > { %v1083_v2 = vsel %vm955_vm0, %v891_v52, %v1019_v62  ;;  %v1115_v3 = vsel %vm987_vm1, %v923_v53, %v1051_v63  ;;  %v892_v4 = vadd.f32 %v2192_v42, %v821_v54  ;;  %v924_v5 = vadd.f32 %v2192_v42, %v853_v55 }
 0x101   : > { %v1081_v6 = vsel %vm953_vm2, %v889_v58, %v1017_v0  ;;  %v1113_v7 = vsel %vm985_vm3, %v921_v59, %v1049_v1  ;;  %v890_v8 = vadd.f32 %v2192_v42, %v819_v60  ;;  %v922_v9 = vadd.f32 %v2192_v42, %v851_v61  ;;  %v1955_v10 = vpop.f32.mrb[4].mxu0  ;;  %v1987_v11 = vpop.f32.mrb[4].mxu1 }
 0x102   : > { %vm956_vm4 = vcmp.ge.f32.partialorder %v892_v4, 0.0  ;;  %v1020_v12 = vmul.f32 0.2, %v892_v4  ;;  %vm988_vm5 = vcmp.ge.f32.partialorder %v924_v5, 0.0  ;;  %v1052_v13 = vmul.f32 0.2, %v924_v5 }
 0x103   : > { %vm954_vm6 = vcmp.ge.f32.partialorder %v890_v8, 0.0  ;;  %v1018_v14 = vmul.f32 0.2, %v890_v8  ;;  %vm986_vm7 = vcmp.ge.f32.partialorder %v922_v9, 0.0  ;;  %v1050_v15 = vmul.f32 0.2, %v922_v9 }
 0x104   : > { %v1084_v16 = vsel %vm956_vm4, %v892_v4, %v1020_v12  ;;  %v1116_v17 = vsel %vm988_vm5, %v924_v5, %v1052_v13  ;;  %v824_v18 = vmul.f32 %v1955_v10, %v2187_v40  ;;  %v856_v19 = vmul.f32 %v1987_v11, %v2187_v40  ;;  %v572_v20 = vpop.f32.mrb[5].mxu0  ;;  %v700_v21 = vpop.f32.mrb[5].mxu1 }
 0x105   : > { %v1710_v22 = vpack.c.bf16 %v1084_v16, %v1083_v2  ;;  %v1790_v23 = vpack.c.bf16 %v1116_v17, %v1115_v3  ;;  %v1082_v24 = vsel %vm954_vm6, %v890_v8, %v1018_v14  ;;  %v1114_v25 = vsel %vm986_vm7, %v922_v9, %v1050_v15  ;;  %v1956_v26 = vpop.f32.mrb[6].mxu0  ;;  %v1988_v27 = vpop.f32.mrb[6].mxu1 }
 0x106   : > { %v1705_v28 = vpack.c.bf16 %v1082_v24, %v1081_v6  ;;  %v1785_v29 = vpack.c.bf16 %v1114_v25, %v1113_v7  ;;  %v895_v30 = vadd.f32 %v2192_v42, %v824_v18  ;;  %v927_v31 = vadd.f32 %v2192_v42, %v856_v19  ;;  %v575_v32 = vpop.f32.mrb[7].mxu0  ;;  %v703_v33 = vpop.f32.mrb[7].mxu1 }
 0x107   : > { %1862 = vst [vmem:[%s2215_s20 + $0x8] sm:$0xff] %v1710_v22   ;;  %1878 = vst [vmem:[%s2215_s20 + $0x88] sm:$0xff] %v1790_v23   ;;  %v822_v34 = vmul.f32 %v2187_v40, %v572_v20  ;;  %v854_v35 = vmul.f32 %v2187_v40, %v700_v21  ;;  %v825_v36 = vmul.f32 %v1956_v26, %v2187_v40 }
 0x108   : > { %v857_v37 = vmul.f32 %v1988_v27, %v2187_v40  ;;  %1706 = vst [vmem:[%s2215_s20] sm:$0xff] %v1705_v28   ;;  %1877 = vst [vmem:[%s2215_s20 + $0x80] sm:$0xff] %v1785_v29   ;;  %vm959_vm8 = vcmp.ge.f32.partialorder %v895_v30, 0.0  ;;  %v1023_v38 = vmul.f32 0.2, %v895_v30  ;;  %vm991_vm9 = vcmp.ge.f32.partialorder %v927_v31, 0.0 }
 0x109   : > { %v1055_v39 = vmul.f32 0.2, %v927_v31  ;;  %v893_v41 = vadd.f32 %v2192_v42, %v822_v34  ;;  %v925_v43 = vadd.f32 %v2192_v42, %v854_v35  ;;  %v896_v44 = vadd.f32 %v2192_v42, %v825_v36  ;;  %v1959_v46 = vpop.f32.mrb[8].mxu0  ;;  %v1991_v47 = vpop.f32.mrb[8].mxu1 }
 0x10a   : > { %v928_v45 = vadd.f32 %v2192_v42, %v857_v37  ;;  %v1087_v48 = vsel %vm959_vm8, %v895_v30, %v1023_v38  ;;  %v823_v50 = vmul.f32 %v2187_v40, %v575_v32  ;;  %v855_v51 = vmul.f32 %v2187_v40, %v703_v33  ;;  %v588_v52 = vpop.f32.mrb[9].mxu0  ;;  %v716_v53 = vpop.f32.mrb[9].mxu1 }
 0x10b   : > { %v1119_v49 = vsel %vm991_vm9, %v927_v31, %v1055_v39  ;;  %vm957_vm10 = vcmp.ge.f32.partialorder %v893_v41, 0.0  ;;  %v1021_v54 = vmul.f32 0.2, %v893_v41  ;;  %vm989_vm11 = vcmp.ge.f32.partialorder %v925_v43, 0.0  ;;  %v1960_v62 = vpop.f32.mrb[10].mxu0  ;;  %v1992_v63 = vpop.f32.mrb[10].mxu1 }
 0x10c   : > { %v1053_v55 = vmul.f32 0.2, %v925_v43  ;;  %vm960_vm12 = vcmp.ge.f32.partialorder %v896_v44, 0.0  ;;  %v1024_v56 = vmul.f32 0.2, %v896_v44  ;;  %vm992_vm13 = vcmp.ge.f32.partialorder %v928_v45, 0.0 }
 0x10d   : > { %v1056_v57 = vmul.f32 0.2, %v928_v45  ;;  %v1085_v58 = vsel %vm957_vm10, %v893_v41, %v1021_v54  ;;  %v894_v60 = vadd.f32 %v2192_v42, %v823_v50  ;;  %v926_v61 = vadd.f32 %v2192_v42, %v855_v51  ;;  %v591_v4 = vpop.f32.mrb[11].mxu0  ;;  %v719_v5 = vpop.f32.mrb[11].mxu1 }
 0x10e   : > { %v1117_v59 = vsel %vm989_vm11, %v925_v43, %v1053_v55  ;;  %v1088_v0 = vsel %vm960_vm12, %v896_v44, %v1024_v56  ;;  %v828_v2 = vmul.f32 %v1959_v46, %v2187_v40  ;;  %v860_v3 = vmul.f32 %v1991_v47, %v2187_v40 }
 0x10f   : > { %v1120_v1 = vsel %vm992_vm13, %v928_v45, %v1056_v57  ;;  %v1720_v6 = vpack.c.bf16 %v1088_v0, %v1087_v48  ;;  %vm958_vm14 = vcmp.ge.f32.partialorder %v894_v60, 0.0  ;;  %v1022_v8 = vmul.f32 0.2, %v894_v60 }
 0x110   : > { %v1800_v7 = vpack.c.bf16 %v1120_v1, %v1119_v49  ;;  %vm990_vm15 = vcmp.ge.f32.partialorder %v926_v61, 0.0  ;;  %v1054_v9 = vmul.f32 0.2, %v926_v61  ;;  %v899_v10 = vadd.f32 %v2192_v42, %v828_v2 }
 0x111   : > { %v931_v11 = vadd.f32 %v2192_v42, %v860_v3  ;;  %1864 = vst [vmem:[%s2215_s20 + $0x18] sm:$0xff] %v1720_v6   ;;  %v1086_v12 = vsel %vm958_vm14, %v894_v60, %v1022_v8  ;;  %v826_v13 = vmul.f32 %v2187_v40, %v588_v52  ;;  %v858_v14 = vmul.f32 %v2187_v40, %v716_v53  ;;  %v1963_v16 = vpop.f32.mrb[12].mxu0  ;;  %v1995_v17 = vpop.f32.mrb[12].mxu1 }
 0x112   : > { %1880 = vst [vmem:[%s2215_s20 + $0x98] sm:$0xff] %v1800_v7   ;;  %v829_v15 = vmul.f32 %v1960_v62, %v2187_v40  ;;  %v1715_v18 = vpack.c.bf16 %v1086_v12, %v1085_v58  ;;  %v1118_v19 = vsel %vm990_vm15, %v926_v61, %v1054_v9  ;;  %vm963_vm0 = vcmp.ge.f32.partialorder %v899_v10, 0.0  ;;  %v604_v21 = vpop.f32.mrb[13].mxu0  ;;  %v732_v22 = vpop.f32.mrb[13].mxu1 }
 0x113   : > { %v1027_v20 = vmul.f32 0.2, %v899_v10  ;;  %v1795_v23 = vpack.c.bf16 %v1118_v19, %v1117_v59  ;;  %vm995_vm1 = vcmp.ge.f32.partialorder %v931_v11, 0.0  ;;  %v1059_v24 = vmul.f32 0.2, %v931_v11  ;;  %v1964_v26 = vpop.f32.mrb[14].mxu0 }
 0x114   : > { %v897_v25 = vadd.f32 %v2192_v42, %v826_v13  ;;  %v2247_v27 = vpop.f32.mrb[14].mxu1  ;;  %1863 = vst [vmem:[%s2215_s20 + $0x10] sm:$0xff] %v1715_v18   ;;  %v929_v29 = vadd.f32 %v2192_v42, %v858_v14  ;;  %v900_v30 = vadd.f32 %v2192_v42, %v829_v15  ;;  %v861_v31 = vmul.f32 %v1992_v63, %v2187_v40  ;;  %v2253_v32 = vpop.f32.mrb[15].mxu0 }
 0x115   : > { %v1091_v28 = vsel %vm963_vm0, %v899_v10, %v1027_v20  ;;  %v2255_v33 = vpop.f32.mrb[15].mxu1  ;;  %1879 = vst [vmem:[%s2215_s20 + $0x90] sm:$0xff] %v1795_v23   ;;  %v1123_v34 = vsel %vm995_vm1, %v931_v11, %v1059_v24  ;;  %v827_v36 = vmul.f32 %v2187_v40, %v591_v4  ;;  %v859_v44 = vmul.f32 %v2187_v40, %v719_v5 }
 0x116   : > { %vm961_vm2 = vcmp.ge.f32.partialorder %v897_v25, 0.0  ;;  %v1025_v35 = vmul.f32 0.2, %v897_v25  ;;  %vm993_vm3 = vcmp.ge.f32.partialorder %v929_v29, 0.0  ;;  %v1057_v37 = vmul.f32 0.2, %v929_v29 }
 0x117   : > { %vm964_vm4 = vcmp.ge.f32.partialorder %v900_v30, 0.0  ;;  %v1028_v38 = vmul.f32 0.2, %v900_v30  ;;  %v932_v41 = vadd.f32 %v2192_v42, %v861_v31  ;;  %v898_v43 = vadd.f32 %v2192_v42, %v827_v36 }
 0x118   : > { %v1089_v39 = vsel %vm961_vm2, %v897_v25, %v1025_v35  ;;  %v1121_v45 = vsel %vm993_vm3, %v929_v29, %v1057_v37  ;;  %v832_v47 = vmul.f32 %v1963_v16, %v2187_v40  ;;  %v864_v48 = vmul.f32 %v1995_v17, %v2187_v40 }
 0x119   : > { %v1092_v46 = vsel %vm964_vm4, %v900_v30, %v1028_v38  ;;  %vm996_vm5 = vcmp.ge.f32.partialorder %v932_v41, 0.0  ;;  %v1060_v50 = vmul.f32 0.2, %v932_v41  ;;  %vm962_vm6 = vcmp.ge.f32.partialorder %v898_v43, 0.0  ;;  %v1967_v51 = vpop.f32.mrb[16].mxu0  ;;  %v2264_v52 = vpop.f32.mrb[16].mxu1 }
 0x11a   : > { %v1730_v49 = vpack.c.bf16 %v1092_v46, %v1091_v28  ;;  %v1026_v53 = vmul.f32 0.2, %v898_v43  ;;  %v930_v54 = vadd.f32 %v2192_v42, %v859_v44  ;;  %v903_v55 = vadd.f32 %v2192_v42, %v832_v47  ;;  %v620_v57 = vpop.f32.mrb[17].mxu0  ;;  %v748_v58 = vpop.f32.mrb[17].mxu1 }
 0x11b   : > { %v935_v56 = vadd.f32 %v2192_v42, %v864_v48  ;;  %v1124_v59 = vsel %vm996_vm5, %v932_v41, %v1060_v50  ;;  %v830_v60 = vmul.f32 %v2187_v40, %v604_v21  ;;  %v862_v61 = vmul.f32 %v2187_v40, %v732_v22  ;;  %v2273_v63 = vpop.f32.mrb[18].mxu0  ;;  %v2275_v0 = vpop.f32.mrb[18].mxu1 }
 0x11c   : > { %1866 = vst [vmem:[%s2215_s20 + $0x28] sm:$0xff] %v1730_v49   ;;  %v833_v62 = vmul.f32 %v1964_v26, %v2187_v40  ;;  %v1810_v1 = vpack.c.bf16 %v1124_v59, %v1123_v34  ;;  %v1090_v2 = vsel %vm962_vm6, %v898_v43, %v1026_v53  ;;  %vm994_vm7 = vcmp.ge.f32.partialorder %v930_v54, 0.0  ;;  %v2278_v4 = vpop.f32.mrb[19].mxu0  ;;  %v2280_v5 = vpop.f32.mrb[19].mxu1 }
 0x11d   : > { %v1058_v3 = vmul.f32 0.2, %v930_v54  ;;  %v1725_v6 = vpack.c.bf16 %v1090_v2, %v1089_v39  ;;  %vm967_vm8 = vcmp.ge.f32.partialorder %v903_v55, 0.0  ;;  %v1031_v7 = vmul.f32 0.2, %v903_v55 }
 0x11e   : > { %vm999_vm9 = vcmp.ge.f32.partialorder %v935_v56, 0.0  ;;  %1882 = vst [vmem:[%s2215_s20 + $0xa8] sm:$0xff] %v1810_v1   ;;  %v1063_v9 = vmul.f32 0.2, %v935_v56  ;;  %v901_v10 = vadd.f32 %v2192_v42, %v830_v60  ;;  %v933_v11 = vadd.f32 %v2192_v42, %v862_v61 }
 0x11f   : > { %v1122_v8 = vsel %vm994_vm7, %v930_v54, %v1058_v3  ;;  %1865 = vst [vmem:[%s2215_s20 + $0x20] sm:$0xff] %v1725_v6   ;;  %v1095_v13 = vsel %vm967_vm8, %v903_v55, %v1031_v7  ;;  %v904_v14 = vadd.f32 %v2192_v42, %v833_v62  ;;  %v865_v15 = vmul.f32 %v2247_v27, %v2187_v40 }
 0x120   : > { %v1805_v12 = vpack.c.bf16 %v1122_v8, %v1121_v45  ;;  %v1127_v16 = vsel %vm999_vm9, %v935_v56, %v1063_v9  ;;  %vm965_vm10 = vcmp.ge.f32.partialorder %v901_v10, 0.0  ;;  %v1029_v17 = vmul.f32 0.2, %v901_v10 }
 0x121   : > { %vm997_vm11 = vcmp.ge.f32.partialorder %v933_v11, 0.0  ;;  %v1061_v18 = vmul.f32 0.2, %v933_v11  ;;  %vm968_vm12 = vcmp.ge.f32.partialorder %v904_v14, 0.0  ;;  %v1032_v19 = vmul.f32 0.2, %v904_v14 }
 0x122   : > { %1881 = vst [vmem:[%s2215_s20 + $0xa0] sm:$0xff] %v1805_v12   ;;  %v936_v20 = vadd.f32 %v2192_v42, %v865_v15  ;;  %v2291_v21 = vpop.f32.mrb[20].mxu0  ;;  %v1093_v22 = vsel %vm965_vm10, %v901_v10, %v1029_v17  ;;  %v831_v23 = vmul.f32 %v2187_v40, %v2253_v32  ;;  %v863_v24 = vmul.f32 %v2187_v40, %v2255_v33  ;;  %v2298_v26 = vpop.f32.mrb[20].mxu1 }
 0x123   : > { %v836_v25 = vmul.f32 %v1967_v51, %v2187_v40  ;;  %v2300_v27 = vpop.f32.mrb[21].mxu0  ;;  %v1125_v28 = vsel %vm997_vm11, %v933_v11, %v1061_v18  ;;  %v1096_v29 = vsel %vm968_vm12, %v904_v14, %v1032_v19  ;;  %v2302_v31 = vpop.f32.mrb[21].mxu1  ;;  %v868_v41 = vmul.f32 %v2264_v52, %v2187_v40 }
 0x124   : > { %vm1000_vm13 = vcmp.ge.f32.partialorder %v936_v20, 0.0  ;;  %v1064_v30 = vmul.f32 0.2, %v936_v20  ;;  %v2304_v34 = vpop.f32.mrb[22].mxu0  ;;  %v1740_v35 = vpack.c.bf16 %v1096_v29, %v1095_v13  ;;  %v902_v32 = vadd.f32 %v2192_v42, %v831_v23  ;;  %v2309_v37 = vpop.f32.mrb[22].mxu1 }
 0x125   : > { %v934_v33 = vadd.f32 %v2192_v42, %v863_v24  ;;  %v907_v36 = vadd.f32 %v2192_v42, %v836_v25  ;;  %v2311_v38 = vpop.f32.mrb[23].mxu0  ;;  %v834_v43 = vmul.f32 %v2187_v40, %v620_v57  ;;  %v866_v44 = vmul.f32 %v2187_v40, %v748_v58  ;;  %v2317_v45 = vpop.f32.mrb[23].mxu1 }
 0x126   : > { %v1128_v39 = vsel %vm1000_vm13, %v936_v20, %v1064_v30  ;;  %1868 = vst [vmem:[%s2215_s20 + $0x38] sm:$0xff] %v1740_v35   ;;  %vm966_vm14 = vcmp.ge.f32.partialorder %v902_v32, 0.0  ;;  %v1030_v47 = vmul.f32 0.2, %v902_v32  ;;  %v939_v50 = vadd.f32 %v2192_v42, %v868_v41 }
 0x127   : > { %v1820_v46 = vpack.c.bf16 %v1128_v39, %v1127_v16  ;;  %vm998_vm15 = vcmp.ge.f32.partialorder %v934_v33, 0.0  ;;  %v1062_v48 = vmul.f32 0.2, %v934_v33  ;;  %vm971_vm0 = vcmp.ge.f32.partialorder %v907_v36, 0.0 }
 0x128   : > { %v1035_v49 = vmul.f32 0.2, %v907_v36  ;;  %v1094_v51 = vsel %vm966_vm14, %v902_v32, %v1030_v47  ;;  %v905_v52 = vadd.f32 %v2192_v42, %v834_v43  ;;  %v937_v53 = vadd.f32 %v2192_v42, %v866_v44 }
 0x129   : > { %1884 = vst [vmem:[%s2215_s20 + $0xb8] sm:$0xff] %v1820_v46   ;;  %v837_v54 = vmul.f32 %v2273_v63, %v2187_v40  ;;  %v1735_v55 = vpack.c.bf16 %v1094_v51, %v1093_v22  ;;  %v1126_v56 = vsel %vm998_vm15, %v934_v33, %v1062_v48  ;;  %vm1003_vm1 = vcmp.ge.f32.partialorder %v939_v50, 0.0  ;;  %v2326_v58 = vpop.f32.mrb[24].mxu0  ;;  %v2328_v59 = vpop.f32.mrb[24].mxu1 }
 0x12a   : > { %v1099_v57 = vsel %vm971_vm0, %v907_v36, %v1035_v49  ;;  %v1815_v60 = vpack.c.bf16 %v1126_v56, %v1125_v28  ;;  %v1067_v61 = vmul.f32 0.2, %v939_v50  ;;  %vm969_vm2 = vcmp.ge.f32.partialorder %v905_v52, 0.0  ;;  %v2330_v1 = vpop.f32.mrb[25].mxu0  ;;  %v2336_v6 = vpop.f32.mrb[25].mxu1 }
 0x12b   : > { %v1033_v62 = vmul.f32 0.2, %v905_v52  ;;  %1867 = vst [vmem:[%s2215_s20 + $0x30] sm:$0xff] %v1735_v55   ;;  %vm1001_vm3 = vcmp.ge.f32.partialorder %v937_v53, 0.0  ;;  %v1065_v2 = vmul.f32 0.2, %v937_v53  ;;  %v908_v63 = vadd.f32 %v2192_v42, %v837_v54 }
 0x12c   : > { %v869_v3 = vmul.f32 %v2275_v0, %v2187_v40  ;;  %v2338_v7 = vpop.f32.mrb[26].mxu0  ;;  %1883 = vst [vmem:[%s2215_s20 + $0xb0] sm:$0xff] %v1815_v60   ;;  %v1131_v8 = vsel %vm1003_vm1, %v939_v50, %v1067_v61  ;;  %v835_v10 = vmul.f32 %v2187_v40, %v2278_v4  ;;  %v867_v11 = vmul.f32 %v2187_v40, %v2280_v5  ;;  %v2346_v12 = vpop.f32.mrb[26].mxu1 }
 0x12d   : > { %v1097_v9 = vsel %vm969_vm2, %v905_v52, %v1033_v62  ;;  %v2348_v13 = vpop.f32.mrb[27].mxu0  ;;  %v1129_v14 = vsel %vm1001_vm3, %v937_v53, %v1065_v2  ;;  %vm972_vm4 = vcmp.ge.f32.partialorder %v908_v63, 0.0  ;;  %v1036_v0 = vmul.f32 0.2, %v908_v63  ;;  %v2351_v16 = vpop.f32.mrb[27].mxu1 }
 0x12e   : > { %v940_v15 = vadd.f32 %v2192_v42, %v869_v3  ;;  %v906_v17 = vadd.f32 %v2192_v42, %v835_v10  ;;  %v938_v18 = vadd.f32 %v2192_v42, %v867_v11  ;;  %v840_v4 = vmul.f32 %v2291_v21, %v2187_v40 }
 0x12f   : > { %v872_v5 = vmul.f32 %v2298_v26, %v2187_v40  ;;  %v1100_v19 = vsel %vm972_vm4, %v908_v63, %v1036_v0  ;;  %v838_v22 = vmul.f32 %v2187_v40, %v2300_v27  ;;  %v870_v33 = vmul.f32 %v2187_v40, %v2302_v31 }
 0x130   : > { %vm1004_vm5 = vcmp.ge.f32.partialorder %v940_v15, 0.0  ;;  %v1068_v20 = vmul.f32 0.2, %v940_v15  ;;  %v1750_v23 = vpack.c.bf16 %v1100_v19, %v1099_v57  ;;  %vm970_vm6 = vcmp.ge.f32.partialorder %v906_v17, 0.0 }
 0x131   : > { %v1034_v24 = vmul.f32 0.2, %v906_v17  ;;  %vm1002_vm7 = vcmp.ge.f32.partialorder %v938_v18, 0.0  ;;  %v1066_v28 = vmul.f32 0.2, %v938_v18  ;;  %v911_v29 = vadd.f32 %v2192_v42, %v840_v4  ;;  %v2363_v30 = vpop.f32.mrb[28].mxu0 }
 0x132   : > { %v1132_v25 = vsel %vm1004_vm5, %v940_v15, %v1068_v20  ;;  %v943_v21 = vadd.f32 %v2192_v42, %v872_v5  ;;  %v2365_v26 = vpop.f32.mrb[28].mxu1  ;;  %1870 = vst [vmem:[%s2215_s20 + $0x48] sm:$0xff] %v1750_v23   ;;  %v909_v27 = vadd.f32 %v2192_v42, %v838_v22  ;;  %v2371_v36 = vpop.f32.mrb[29].mxu0  ;;  %v941_v53 = vadd.f32 %v2192_v42, %v870_v33 }
 0x133   : > { %v1830_v35 = vpack.c.bf16 %v1132_v25, %v1131_v8  ;;  %v1098_v32 = vsel %vm970_vm6, %v906_v17, %v1034_v24  ;;  %v2373_v39 = vpop.f32.mrb[29].mxu1  ;;  %v1130_v43 = vsel %vm1002_vm7, %v938_v18, %v1066_v28  ;;  %vm975_vm8 = vcmp.ge.f32.partialorder %v911_v29, 0.0  ;;  %v2375_v46 = vpop.f32.mrb[30].mxu0 }
 0x134   : > { %v1745_v41 = vpack.c.bf16 %v1098_v32, %v1097_v9  ;;  %v1039_v44 = vmul.f32 0.2, %v911_v29  ;;  %v2377_v47 = vpop.f32.mrb[30].mxu1  ;;  %v1825_v48 = vpack.c.bf16 %v1130_v43, %v1129_v14  ;;  %vm1007_vm9 = vcmp.ge.f32.partialorder %v943_v21, 0.0  ;;  %v2380_v31 = vpop.f32.mrb[31].mxu0 }
 0x135   : > { %1886 = vst [vmem:[%s2215_s20 + $0xc8] sm:$0xff] %v1830_v35   ;;  %v1071_v49 = vmul.f32 0.2, %v943_v21  ;;  %vm973_vm10 = vcmp.ge.f32.partialorder %v909_v27, 0.0  ;;  %v2382_v50 = vpop.f32.mrb[31].mxu1  ;;  %v841_v54 = vmul.f32 %v2304_v34, %v2187_v40  ;;  %v873_v56 = vmul.f32 %v2309_v37, %v2187_v40 }
 0x136   : > { %1869 = vst [vmem:[%s2215_s20 + $0x40] sm:$0xff] %v1745_v41   ;;  %v1103_v51 = vsel %vm975_vm8, %v911_v29, %v1039_v44  ;;  %v1037_v52 = vmul.f32 0.2, %v909_v27  ;;  %1885 = vst [vmem:[%s2215_s20 + $0xc0] sm:$0xff] %v1825_v48   ;;  %v839_v57 = vmul.f32 %v2187_v40, %v2311_v38  ;;  %v871_v60 = vmul.f32 %v2187_v40, %v2317_v45 }
 0x137   : > { %v1135_v55 = vsel %vm1007_vm9, %v943_v21, %v1071_v49  ;;  %vm1005_vm11 = vcmp.ge.f32.partialorder %v941_v53, 0.0  ;;  %v1069_v62 = vmul.f32 0.2, %v941_v53  ;;  %v912_v2 = vadd.f32 %v2192_v42, %v841_v54 }
 0x138   : > { %v1101_v61 = vsel %vm973_vm10, %v909_v27, %v1037_v52  ;;  %v944_v63 = vadd.f32 %v2192_v42, %v873_v56  ;;  %v910_v34 = vadd.f32 %v2192_v42, %v839_v57  ;;  %v942_v3 = vadd.f32 %v2192_v42, %v871_v60 }
 0x139   : > { %v844_v37 = vmul.f32 %v2326_v58, %v2187_v40  ;;  %v1133_v8 = vsel %vm1005_vm11, %v941_v53, %v1069_v62  ;;  %vm976_vm12 = vcmp.ge.f32.partialorder %v912_v2, 0.0  ;;  %v1040_v38 = vmul.f32 0.2, %v912_v2 }
 0x13a   : > { %v876_v45 = vmul.f32 %v2328_v59, %v2187_v40  ;;  %vm1008_vm13 = vcmp.ge.f32.partialorder %v944_v63, 0.0  ;;  %v1072_v9 = vmul.f32 0.2, %v944_v63  ;;  %vm974_vm14 = vcmp.ge.f32.partialorder %v910_v34, 0.0 }
 0x13b   : > { %v1038_v10 = vmul.f32 0.2, %v910_v34  ;;  %v1104_v11 = vsel %vm976_vm12, %v912_v2, %v1040_v38  ;;  %vm1006_vm15 = vcmp.ge.f32.partialorder %v942_v3, 0.0  ;;  %v1070_v14 = vmul.f32 0.2, %v942_v3 }
 0x13c   : > { %v915_v0 = vadd.f32 %v2192_v42, %v844_v37  ;;  %v1760_v15 = vpack.c.bf16 %v1104_v11, %v1103_v51  ;;  %v1136_v58 = vsel %vm1008_vm13, %v944_v63, %v1072_v9  ;;  %v947_v18 = vadd.f32 %v2192_v42, %v876_v45 }
 0x13d   : > { %v1102_v17 = vsel %vm974_vm14, %v910_v34, %v1038_v10  ;;  %v1840_v4 = vpack.c.bf16 %v1136_v58, %v1135_v55  ;;  %v1134_v5 = vsel %vm1006_vm15, %v942_v3, %v1070_v14  ;;  %v842_v23 = vmul.f32 %v2187_v40, %v2330_v1 }
 0x13e   : > { %v1755_v59 = vpack.c.bf16 %v1102_v17, %v1101_v61  ;;  %vm979_vm0 = vcmp.ge.f32.partialorder %v915_v0, 0.0  ;;  %1872 = vst [vmem:[%s2215_s20 + $0x58] sm:$0xff] %v1760_v15   ;;  %v1835_v19 = vpack.c.bf16 %v1134_v5, %v1133_v8  ;;  %v1043_v20 = vmul.f32 0.2, %v915_v0 }
 0x13f   : > { %vm1011_vm1 = vcmp.ge.f32.partialorder %v947_v18, 0.0  ;;  %v1075_v22 = vmul.f32 0.2, %v947_v18  ;;  %1888 = vst [vmem:[%s2215_s20 + $0xd8] sm:$0xff] %v1840_v4   ;;  %v874_v24 = vmul.f32 %v2187_v40, %v2336_v6  ;;  %v845_v25 = vmul.f32 %v2338_v7, %v2187_v40 }
 0x140   : > { %1871 = vst [vmem:[%s2215_s20 + $0x50] sm:$0xff] %v1755_v59   ;;  %v877_v28 = vmul.f32 %v2346_v12, %v2187_v40  ;;  %1887 = vst [vmem:[%s2215_s20 + $0xd0] sm:$0xff] %v1835_v19   ;;  %v1107_v29 = vsel %vm979_vm0, %v915_v0, %v1043_v20  ;;  %v843_v35 = vmul.f32 %v2187_v40, %v2348_v13 }
 0x141   : > { %v1139_v21 = vsel %vm1011_vm1, %v947_v18, %v1075_v22  ;;  %v875_v32 = vmul.f32 %v2187_v40, %v2351_v16  ;;  %v913_v1 = vadd.f32 %v2192_v42, %v842_v23  ;;  %v945_v27 = vadd.f32 %v2192_v42, %v874_v24 }
 0x142   : > { %v916_v6 = vadd.f32 %v2192_v42, %v845_v25  ;;  %v948_v7 = vadd.f32 %v2192_v42, %v877_v28  ;;  %v914_v33 = vadd.f32 %v2192_v42, %v843_v35  ;;  %v848_v41 = vmul.f32 %v2363_v30, %v2187_v40 }
 0x143   : > { %v946_v12 = vadd.f32 %v2192_v42, %v875_v32  ;;  %v880_v13 = vmul.f32 %v2365_v26, %v2187_v40  ;;  %vm977_vm2 = vcmp.ge.f32.partialorder %v913_v1, 0.0  ;;  %v1041_v16 = vmul.f32 0.2, %v913_v1 }
 0x144   : > { %vm1009_vm3 = vcmp.ge.f32.partialorder %v945_v27, 0.0  ;;  %v1073_v43 = vmul.f32 0.2, %v945_v27  ;;  %vm980_vm4 = vcmp.ge.f32.partialorder %v916_v6, 0.0  ;;  %v1044_v44 = vmul.f32 0.2, %v916_v6 }
 0x145   : > { %vm1012_vm5 = vcmp.ge.f32.partialorder %v948_v7, 0.0  ;;  %v1076_v48 = vmul.f32 0.2, %v948_v7  ;;  %v1105_v49 = vsel %vm977_vm2, %v913_v1, %v1041_v16  ;;  %vm978_vm6 = vcmp.ge.f32.partialorder %v914_v33, 0.0 }
 0x146   : > { %v1137_v51 = vsel %vm1009_vm3, %v945_v27, %v1073_v43  ;;  %v1042_v52 = vmul.f32 0.2, %v914_v33  ;;  %v1108_v53 = vsel %vm980_vm4, %v916_v6, %v1044_v44  ;;  %vm1010_vm7 = vcmp.ge.f32.partialorder %v946_v12, 0.0 }
 0x147   : > { %v1140_v54 = vsel %vm1012_vm5, %v948_v7, %v1076_v48  ;;  %v1074_v30 = vmul.f32 0.2, %v946_v12  ;;  %v1770_v26 = vpack.c.bf16 %v1108_v53, %v1107_v29  ;;  %v919_v57 = vadd.f32 %v2192_v42, %v848_v41 }
 0x148   : > { %v1850_v55 = vpack.c.bf16 %v1140_v54, %v1139_v21  ;;  %v1106_v56 = vsel %vm978_vm6, %v914_v33, %v1042_v52  ;;  %v951_v62 = vadd.f32 %v2192_v42, %v880_v13  ;;  %v846_v2 = vmul.f32 %v2187_v40, %v2371_v36 }
 0x149   : > { %v1765_v60 = vpack.c.bf16 %v1106_v56, %v1105_v49  ;;  %v1138_v61 = vsel %vm1010_vm7, %v946_v12, %v1074_v30  ;;  %1874 = vst [vmem:[%s2215_s20 + $0x68] sm:$0xff] %v1770_v26   ;;  %v1047_v34 = vmul.f32 0.2, %v919_v57  ;;  %v878_v3 = vmul.f32 %v2187_v40, %v2373_v39 }
 0x14a   : > { %1890 = vst [vmem:[%s2215_s20 + $0xe8] sm:$0xff] %v1850_v55   ;;  %v1845_v63 = vpack.c.bf16 %v1138_v61, %v1137_v51  ;;  %vm983_vm8 = vcmp.ge.f32.partialorder %v919_v57, 0.0  ;;  %v917_v37 = vadd.f32 %v2192_v42, %v846_v2  ;;  %v849_v8 = vmul.f32 %v2375_v46, %v2187_v40 }
 0x14b   : > { %1873 = vst [vmem:[%s2215_s20 + $0x60] sm:$0xff] %v1765_v60   ;;  %v1079_v38 = vmul.f32 0.2, %v951_v62  ;;  %v881_v45 = vmul.f32 %v2377_v47, %v2187_v40  ;;  %v847_v36 = vmul.f32 %v2187_v40, %v2380_v31  ;;  %vm1015_vm9 = vcmp.ge.f32.partialorder %v951_v62, 0.0 }
 0x14c   : > { %1889 = vst [vmem:[%s2215_s20 + $0xe0] sm:$0xff] %v1845_v63   ;;  %v949_v9 = vadd.f32 %v2192_v42, %v878_v3  ;;  %v920_v39 = vadd.f32 %v2192_v42, %v849_v8  ;;  %v1111_v10 = vsel %vm983_vm8, %v919_v57, %v1047_v34  ;;  %v1045_v11 = vmul.f32 0.2, %v917_v37 }
 0x14d   : > { %v952_v14 = vadd.f32 %v2192_v42, %v881_v45  ;;  %v918_v0 = vadd.f32 %v2192_v42, %v847_v36  ;;  %vm981_vm10 = vcmp.ge.f32.partialorder %v917_v37, 0.0  ;;  %v879_v47 = vmul.f32 %v2187_v40, %v2382_v50 }
 0x14e   : > { %vm984_vm11 = vcmp.ge.f32.partialorder %v920_v39, 0.0  ;;  %v1048_v46 = vmul.f32 0.2, %v920_v39  ;;  %v1143_v15 = vsel %vm1015_vm9, %v951_v62, %v1079_v38  ;;  %v1077_v58 = vmul.f32 0.2, %v949_v9 }
 0x14f   : > { %vm1016_vm12 = vcmp.ge.f32.partialorder %v952_v14, 0.0  ;;  %v1080_v31 = vmul.f32 0.2, %v952_v14  ;;  %vm982_vm13 = vcmp.ge.f32.partialorder %v918_v0, 0.0  ;;  %v1046_v18 = vmul.f32 0.2, %v918_v0 }
 0x150   : > { %v1112_v17 = vsel %vm984_vm11, %v920_v39, %v1048_v46  ;;  %v950_v4 = vadd.f32 %v2192_v42, %v879_v47  ;;  %v1109_v59 = vsel %vm981_vm10, %v917_v37, %v1045_v11  ;;  %vm1013_vm14 = vcmp.ge.f32.partialorder %v949_v9, 0.0 }
 0x151   : > { %v1780_v5 = vpack.c.bf16 %v1112_v17, %v1111_v10  ;;  %v1144_v19 = vsel %vm1016_vm12, %v952_v14, %v1080_v31  ;;  %v1110_v22 = vsel %vm982_vm13, %v918_v0, %v1046_v18  ;;  %v1141_v23 = vsel %vm1013_vm14, %v949_v9, %v1077_v58 }
 0x152   : > { %v1860_v20 = vpack.c.bf16 %v1144_v19, %v1143_v15  ;;  %vm1014_vm15 = vcmp.ge.f32.partialorder %v950_v4, 0.0  ;;  %v1078_v40 = vmul.f32 0.2, %v950_v4  ;;  %v1775_v50 = vpack.c.bf16 %v1110_v22, %v1109_v59 }
 0x153   : > { %1876 = vst [vmem:[%s2215_s20 + $0x78] sm:$0xff] %v1780_v5  }
 0x154   : > { %1892 = vst [vmem:[%s2215_s20 + $0xf8] sm:$0xff] %v1860_v20   ;;  %v1142_v24 = vsel %vm1014_vm15, %v950_v4, %v1078_v40  ;;  %1875 = vst [vmem:[%s2215_s20 + $0x70] sm:$0xff] %v1775_v50  }
 0x155   : > { %v1855_v25 = vpack.c.bf16 %v1142_v24, %v1141_v23 }
 0x157   : > { %1891 = vst [vmem:[%s2215_s20 + $0xf0] sm:$0xff] %v1855_v25  }
 0x158 PF: > { %s14_s15 = sadd.s32 1, %s2083_s15  }
 0x159   : > { %p11_p4 = scmp.ge.s32.totalorder %s14_s15, 34  }
 0x15b   :  { %13 = sbr.rel (!%p11_p4) target bundleno = 1 (0x1), region = 66 }

</bundles_post_ra>
